<compile_context>
chip_gen: v5e
topology: v5e:2x2
jax: 0.10.0
libtpu: 0.0.40
codegen_flags: <defaults>
</compile_context>

<pallas_src>
import functools

import jax
import jax.numpy as jnp
from jax import lax
from jax.experimental import pallas as pl
from jax.experimental.pallas import tpu as pltpu

# Module hyperparameters (the PyTorch file references globals; pick small values).
INPUT_SIZE = 64
HIDDEN_SIZE = 32
NUM_CLASSES = 10
BATCH = 32          # -> 2 batch tiles of 16: exercises the parallel grid axis

_LANE = 128
_SUBLANE_BF16 = 16  # bf16 packs two rows per sublane -> tiles in multiples of 16


def _round_up(n, m):
    return ((n + m - 1) // m) * m


def mlp_kernel(x_ref, w1_ref, b1_ref, w2_ref, b2_ref, o_ref):
    # Cast activations to the MXU compute dtype inside the kernel (input DMA
    # stays f32 straight from the caller's buffer; no wrapper-side pass).
    x = x_ref[...].astype(w1_ref.dtype)
    # fc1: x [TB, IN] (bf16) contracted with W1 [HID_P, IN] (bf16) on the
    # input dim -> [TB, HID_P] f32 accumulator on the MXU.
    h = lax.dot_general(
        x, w1_ref[...],
        dimension_numbers=(((1,), (1,)), ((), ())),
        preferred_element_type=jnp.float32,
    )
    # Bias + ReLU epilogue in f32 on the VPU (keep f32: v5e VPU has no bf16).
    h = jnp.maximum(h + b1_ref[...], 0.0)
    # fc2: h [TB, HID_P] contracted with W2 [NC_P, HID_P] on the hidden dim.
    out = lax.dot_general(
        h.astype(w2_ref.dtype), w2_ref[...],
        dimension_numbers=(((1,), (1,)), ((), ())),
        preferred_element_type=jnp.float32,
    )
    # bf16 writeback halves the dominant HBM stream (128 padded lanes).
    o_ref[...] = (out + b2_ref[...]).astype(o_ref.dtype)


def prepare_params(w1, b1, w2, b2, compute_dtype=jnp.bfloat16):
    """One-time prep: zero-pad ONLY the output-feature dims to 128-lane
    multiples, cast weights to the MXU compute dtype (bf16), keep biases f32.
    PyTorch [out, in] layout is preserved (no transposes). The input-feature
    dim is left unpadded so x can be fed to the kernel as-is."""
    hid, in_sz = w1.shape
    nc = w2.shape[0]
    hid_p = _round_up(hid, _LANE)
    nc_p = _round_up(nc, _LANE)

    w1_p = jnp.zeros((hid_p, in_sz), compute_dtype).at[:hid, :].set(
        w1.astype(compute_dtype))
    b1_p = jnp.zeros((1, hid_p), jnp.float32).at[0, :hid].set(
        b1.astype(jnp.float32))
    w2_p = jnp.zeros((nc_p, hid_p), compute_dtype).at[:nc, :hid].set(
        w2.astype(compute_dtype))
    b2_p = jnp.zeros((1, nc_p), jnp.float32).at[0, :nc].set(
        b2.astype(jnp.float32))
    return w1_p, b1_p, w2_p, b2_p


@functools.partial(jax.jit, static_argnames=("block_b",))
def neural_net_forward(x, w1_p, b1_p, w2_p, b2_p, *, block_b=2048):
    """x: [B, input_size] f32 (PyTorch nn.Linear input layout, unpadded).
    Returns the padded [B, nc_p] bf16 logits; the first num_classes columns
    are the real logits, the rest are bias-padding (zeros).  Consumers should
    slice/fuse (argmax, loss) on this padded layout instead of forcing a
    separate full-pass slice here."""
    B, in_sz = x.shape
    hid_p = w1_p.shape[0]
    nc_p = w2_p.shape[0]

    # Batch tile: at least 2 grid steps when the batch allows it (so both v7x
    # TensorCores get work under "parallel"), rounded to the bf16 sublane
    # multiple (16), capped at block_b (fat steps amortize ~0.35us/step).
    two_step_tb = _round_up(pl.cdiv(_round_up(B, _SUBLANE_BF16), 2),
                            _SUBLANE_BF16)
    tb = max(_SUBLANE_BF16, min(block_b, two_step_tb))
    grid = (pl.cdiv(B, tb),)

    # Advisory cost hint: true FLOPs/bytes (kernel is HBM/overhead bound, not MXU).
    hid = HIDDEN_SIZE
    nc = NUM_CLASSES
    cost = pl.CostEstimate(
        flops=2 * B * (in_sz * hid + hid * nc),
        transcendentals=0,
        bytes_accessed=(B * in_sz * 4            # x read (f32)
                        + B * nc_p * 2           # out write (bf16, padded lanes)
                        + w1_p.size * 2 + w2_p.size * 2
                        + b1_p.size * 4 + b2_p.size * 4),
    )

    out = pl.pallas_call(
        mlp_kernel,
        out_shape=jax.ShapeDtypeStruct((B, nc_p), jnp.bfloat16),
        grid=grid,
        in_specs=[
            # Activations: tiled over batch; last dim == full array dim (64),
            # so the (8,128) divisibility rule is satisfied without padding.
            pl.BlockSpec((tb, in_sz), lambda i: (i, 0)),
            pl.BlockSpec((hid_p, in_sz), lambda i: (0, 0)),   # W1: resident
            pl.BlockSpec((1, hid_p), lambda i: (0, 0)),       # b1
            pl.BlockSpec((nc_p, hid_p), lambda i: (0, 0)),    # W2: resident
            pl.BlockSpec((1, nc_p), lambda i: (0, 0)),        # b2
        ],
        out_specs=pl.BlockSpec((tb, nc_p), lambda i: (i, 0)),  # lane-dense bf16 stores
        compiler_params=pltpu.CompilerParams(
            dimension_semantics=("parallel",),                 # batch tiles independent
        ),
        cost_estimate=cost,
    )(x, w1_p, b1_p, w2_p, b2_p)
    return out


def init_params(key):
    """Deterministic init mimicking PyTorch nn.Linear defaults:
    U(-1/sqrt(fan_in), 1/sqrt(fan_in)) for both weight and bias."""
    k1, k2, k3, k4 = jax.random.split(key, 4)
    bound1 = 1.0 / jnp.sqrt(INPUT_SIZE)
    bound2 = 1.0 / jnp.sqrt(HIDDEN_SIZE)
    w1 = jax.random.uniform(k1, (HIDDEN_SIZE, INPUT_SIZE), jnp.float32,
                            -bound1, bound1)
    b1 = jax.random.uniform(k2, (HIDDEN_SIZE,), jnp.float32, -bound1, bound1)
    w2 = jax.random.uniform(k3, (NUM_CLASSES, HIDDEN_SIZE), jnp.float32,
                            -bound2, bound2)
    b2 = jax.random.uniform(k4, (NUM_CLASSES,), jnp.float32, -bound2, bound2)
    return w1, b1, w2, b2


if __name__ == "__main__":
    key = jax.random.PRNGKey(0)
    k_x, k_p = jax.random.split(key)
    x = jax.random.normal(k_x, (BATCH, INPUT_SIZE), jnp.float32)
    w1, b1, w2, b2 = init_params(k_p)

    # One-time param prep (pad out-feature dims to 128 lanes, cast to bf16).
    w1_p, b1_p, w2_p, b2_p = prepare_params(w1, b1, w2, b2)

    # BATCH=32 -> tb=16, grid=(2,): exercises the parallel batch axis.
    out_padded = neural_net_forward(x, w1_p, b1_p, w2_p, b2_p)
    out_padded = jax.block_until_ready(out_padded)

    # Consumer-side slice to the logical logits (this is where argmax/loss
    # would normally fuse instead).
    out = out_padded[:, :NUM_CLASSES].astype(jnp.float32)

    # Sanity check against a pure-JAX f32 reference of the same forward pass.
    # bf16 MXU operands + bf16 output with f32 accumulation -> ~1% rel error.
    ref = jnp.maximum(x @ w1.T + b1, 0.0) @ w2.T + b2
    assert out.shape == (BATCH, NUM_CLASSES)
    assert jnp.allclose(out, ref, atol=5e-2, rtol=5e-2), (
        float(jnp.max(jnp.abs(out - ref))))

    print("KERNEL_OK")
</pallas_src>

<mosaic_0001>
module attributes {stable_mosaic.version = 11 : i64} {
  func.func @mlp_kernel(%arg0: i32, %arg1: memref<16x64xf32, #tpu.memory_space<vmem>>, %arg2: memref<128x64xbf16, #tpu.memory_space<vmem>>, %arg3: memref<1x128xf32, #tpu.memory_space<vmem>>, %arg4: memref<128x128xbf16, #tpu.memory_space<vmem>>, %arg5: memref<1x128xf32, #tpu.memory_space<vmem>>, %arg6: memref<16x128xbf16, #tpu.memory_space<vmem>>) attributes {dimension_semantics = [#tpu.dimension_semantics<parallel>], iteration_bounds = array<i64: 2>, scalar_prefetch = 0 : i64, scratch_operands = 0 : i64, tpu.core_type = #tpu.core_type<tc>, window_params = [{transform_indices = @transform_0, window_bounds = array<i64: 16, 64>}, {pipeline_mode = #tpu.pipeline_mode<synchronous>, transform_indices = @transform_1, window_bounds = array<i64: 128, 64>}, {pipeline_mode = #tpu.pipeline_mode<synchronous>, transform_indices = @transform_2, window_bounds = array<i64: 1, 128>}, {pipeline_mode = #tpu.pipeline_mode<synchronous>, transform_indices = @transform_3, window_bounds = array<i64: 128, 128>}, {pipeline_mode = #tpu.pipeline_mode<synchronous>, transform_indices = @transform_4, window_bounds = array<i64: 1, 128>}, {transform_indices = @transform_5, window_bounds = array<i64: 16, 128>}]} {
    %c0 = arith.constant 0 : index
    %c0_0 = arith.constant 0 : index
    %0 = vector.load %arg1[%c0, %c0_0] : memref<16x64xf32, #tpu.memory_space<vmem>>, vector<16x64xf32>
    %1 = arith.truncf %0 : vector<16x64xf32> to vector<16x64xbf16>
    %c0_1 = arith.constant 0 : index
    %c0_2 = arith.constant 0 : index
    %2 = vector.load %arg2[%c0_1, %c0_2] : memref<128x64xbf16, #tpu.memory_space<vmem>>, vector<128x64xbf16>
    %cst = arith.constant dense<0.000000e+00> : vector<16x128xf32>
    %3 = tpu.matmul %1, %2, %cst {dimension_numbers = #tpu.dot_dimension_numbers<[1], [1], [0], [0], [0, 0, 1, 0], [], []>} : vector<16x64xbf16>, vector<128x64xbf16>, vector<16x128xf32> -> vector<16x128xf32>
    %c0_3 = arith.constant 0 : index
    %c0_4 = arith.constant 0 : index
    %4 = vector.load %arg3[%c0_3, %c0_4] : memref<1x128xf32, #tpu.memory_space<vmem>>, vector<1x128xf32>
    %5 = vector.broadcast %4 : vector<1x128xf32> to vector<16x128xf32>
    %6 = arith.addf %3, %5 : vector<16x128xf32>
    %cst_5 = arith.constant 0.000000e+00 : f32
    %7 = vector.broadcast %cst_5 : f32 to vector<16x128xf32>
    %8 = arith.maximumf %6, %7 : vector<16x128xf32>
    %9 = arith.truncf %8 : vector<16x128xf32> to vector<16x128xbf16>
    %c0_6 = arith.constant 0 : index
    %c0_7 = arith.constant 0 : index
    %10 = vector.load %arg4[%c0_6, %c0_7] : memref<128x128xbf16, #tpu.memory_space<vmem>>, vector<128x128xbf16>
    %cst_8 = arith.constant dense<0.000000e+00> : vector<16x128xf32>
    %11 = tpu.matmul %9, %10, %cst_8 {dimension_numbers = #tpu.dot_dimension_numbers<[1], [1], [0], [0], [0, 0, 1, 0], [], []>} : vector<16x128xbf16>, vector<128x128xbf16>, vector<16x128xf32> -> vector<16x128xf32>
    %c0_9 = arith.constant 0 : index
    %c0_10 = arith.constant 0 : index
    %12 = vector.load %arg5[%c0_9, %c0_10] : memref<1x128xf32, #tpu.memory_space<vmem>>, vector<1x128xf32>
    %13 = vector.broadcast %12 : vector<1x128xf32> to vector<16x128xf32>
    %14 = arith.addf %11, %13 : vector<16x128xf32>
    %15 = arith.truncf %14 : vector<16x128xf32> to vector<16x128xbf16>
    %c0_11 = arith.constant 0 : index
    %c0_12 = arith.constant 0 : index
    %16 = vector.load %arg6[%c0_11, %c0_12] : memref<16x128xbf16, #tpu.memory_space<vmem>>, vector<16x128xbf16>
    tpu.vector_store %arg6[%c0_11, %c0_12], %15 {strides = array<i32>} : memref<16x128xbf16, #tpu.memory_space<vmem>>, vector<16x128xbf16>,
    return
  }
  func.func @transform_0(%arg0: i32) -> (i32, i32) {
    %c0_i32 = arith.constant 0 : i32
    %c0_i32_0 = arith.constant 0 : i32
    return %arg0, %c0_i32 : i32, i32
  }
  func.func @transform_1(%arg0: i32) -> (i32, i32) {
    %c0_i32 = arith.constant 0 : i32
    %c0_i32_0 = arith.constant 0 : i32
    %c0_i32_1 = arith.constant 0 : i32
    return %c0_i32, %c0_i32_0 : i32, i32
  }
  func.func @transform_2(%arg0: i32) -> (i32, i32) {
    %c0_i32 = arith.constant 0 : i32
    %c0_i32_0 = arith.constant 0 : i32
    %c0_i32_1 = arith.constant 0 : i32
    return %c0_i32, %c0_i32_0 : i32, i32
  }
  func.func @transform_3(%arg0: i32) -> (i32, i32) {
    %c0_i32 = arith.constant 0 : i32
    %c0_i32_0 = arith.constant 0 : i32
    %c0_i32_1 = arith.constant 0 : i32
    return %c0_i32, %c0_i32_0 : i32, i32
  }
  func.func @transform_4(%arg0: i32) -> (i32, i32) {
    %c0_i32 = arith.constant 0 : i32
    %c0_i32_0 = arith.constant 0 : i32
    %c0_i32_1 = arith.constant 0 : i32
    return %c0_i32, %c0_i32_0 : i32, i32
  }
  func.func @transform_5(%arg0: i32) -> (i32, i32) {
    %c0_i32 = arith.constant 0 : i32
    %c0_i32_0 = arith.constant 0 : i32
    return %arg0, %c0_i32 : i32, i32
  }
}

</mosaic_0001>

<bundles_post_ra>
// kernel: neural_net_forward.1
= control target key start
LH: loop header
LB: loop body
LE: loop exit
PB: predicated region body
PF: predicated region fallthrough
CT: control target
= control target key end

     0   :  { %10 = vsyncpa [#allocation3], 0  ;;  %s886_s0 = inlined_call_operand.vmem [shape: f32[32,64], index: 0, kind: input, shape index: {}]   ;;  %s887_s1 = inlined_call_operand.vmem [shape: bf16[128,64], index: 1, kind: input, shape index: {}]   ;;  %s888_s2 = inlined_call_operand.vmem [shape: f32[1,128], index: 2, kind: input, shape index: {}]   ;;  %s889_s3 = inlined_call_operand.vmem [shape: bf16[128,128], index: 3, kind: input, shape index: {}]   ;;  %s890_s4 = inlined_call_operand.vmem [shape: f32[1,128], index: 4, kind: input, shape index: {}]   ;;  %s891_s5 = inlined_call_operand.hbm [shape: bf16[32,128], index: 5, kind: output, shape index: {}]  }
   0x1   :  { %12 = vsyncpa [#allocation3 + $0x1], 0  ;;  %s736_s18 = smov 0   ;;  %s738_s19 = smov 0  }
   0x2   :  { %s740_s20 = smov 0   ;;  %s742_s21 = smov 0  }
   0x3 LB: > { %s757_s22 = sadd.s32 4294967295, %s702_s21   ;;  %s498_s23 = sadd.s32 4294967294, %s702_s21   ;;  %s702_s21 = sphi %s742_s21, %s897_s21   ;;  %s698_s20 = sphi %s740_s20, %s896_s20   ;;  %s694_s19 = sphi %s738_s19, %s895_s19   ;;  %s690_s18 = sphi %s736_s18, %s894_s18  }
   0x4   : > { %s761_s24 = sadd.s32 1, %s702_s21   ;;  %s135_s25 = sadd.s32 1, %s698_s20 }
   0x5   : > { %s132_s26 = ssub.s32 %s702_s21, %s761_s24  ;;  %p145_p0 = scmp.ne.s32.totalorder %s698_s20, %s694_s19 }
   0x6   : > { %p133_p1 = scmp.eq.s32.totalorder %s132_s26, 0  ;;  %p146_p2 = scmp.eq.s32.totalorder %s757_s22, 1 }
   0x7   : > { %p151_p3 = scmp.ne.s32.totalorder %s694_s19, %s690_s18  ;;  %p152_p4 = scmp.eq.s32.totalorder %s498_s23, 1 }
   0x8   : > { %s772_s27 = scalar_select %p133_p1, %s698_s20, %s135_s25  }
   0x9   : > { %p774_p5 = por %p146_p2, %p145_p0  ;;  %p778_p6 = por %p152_p4, %p151_p3 }
   0xa   : > { %p501_p7 = scmp.ge.s32.totalorder %s702_s21, 1  ;;  %p191_p8 = scmp.lt.s32.totalorder %s702_s21, 3 }
   0xc   : > { %p192_p9 = pnand %p501_p7, %p191_p8 }
   0xd   : > { %s503_s30 = sshll.u32 (!%p192_p9), %s757_s22, 1  ;;  %s591_s14 = sshll.u32 (!%p192_p9), %s757_s22, 3 }
   0xe   : > { %195 = sbr.rel (%p192_p9) target bundleno = 366 (0x16e), region = 40  ;;  %p220_p10 = scmp.lt.s32.totalorder (!%p192_p9), %s503_s30, 3 }
   0xf   : > { %s432_s17 = scalar_lea.hbm (!%p192_p9), %s891_s5, %s591_s14  ;;  %s660_s11 = scalar_lea.hbm (!%p192_p9), %s891_s5, 16 }
  0x10   : > { %s435_s6 = sshll.u32 (!%p192_p9), %s432_s17, 4  ;;  %s436_s6 = int_to_ptr.hbm [resolvable:$true] %s435_s6 }
  0x11   : > { %s654_s7 = sshra.s32 (!%p192_p9), %s436_s6, 4  ;;  %s655_s7 = int_to_ptr.hbm [resolvable:$true] %s654_s7 }
  0x12   : > { %s656_s8 = scalar_lea.hbm (!%p192_p9), %s655_s7, 8  ;;  %p661_p0 = scmp.lt.s32.totalorder (!%p192_p9), %s655_s7, %s891_s5 }
  0x13   : > { %v582_v0 = vld [vmem:[%s887_s1 + $0x38] sm:$0xff]  ;;  %vm289_vm0 = vcmask 523264   ;;  %v581_v2 = vld [vmem:[%s887_s1 + $0x30] sm:$0xff]  ;;  %v580_v4 = vld [vmem:[%s887_s1 + $0x28] sm:$0xff]  ;;  %s899_s30 = smov (!%p220_p10, %s503_s30), 3  ;;  %p657_p11 = scmp.ne.s32.totalorder %s655_s7, %s656_s8 }
  0x14   : > { %v315_v1 = vsel %vm289_vm0, %v582_v0, 0  ;;  %v312_v3 = vsel %vm289_vm0, %v581_v2, 0  ;;  %v309_v5 = vsel %vm289_vm0, %v580_v4, 0  ;;  %v579_v6 = vld [vmem:[%s887_s1 + $0x20] sm:$0xff]  ;;  %v578_v8 = vld [vmem:[%s887_s1 + $0x18] sm:$0xff]  ;;  %v577_v11 = vld [vmem:[%s887_s1 + $0x10] sm:$0xff]  ;;  %p662_p1 = scmp.lt.s32.totalorder %s660_s11, %s656_s8 }
  0x15   : > { %317 = vmatpush.bf16.xpose.msra.mxu0 %v315_v1  ;;  %v306_v7 = vsel %vm289_vm0, %v579_v6, 0  ;;  %v303_v9 = vsel %vm289_vm0, %v578_v8, 0  ;;  %v590_v10 = vld [vmem:[%s889_s3 + $0x38] sm:$0xff]  ;;  %v300_v12 = vsel %vm289_vm0, %v577_v11, 0  ;;  %v589_v13 = vld [vmem:[%s889_s3 + $0x30] sm:$0xff]  ;;  %v576_v14 = vld [vmem:[%s887_s1 + $0x8] sm:$0xff]  ;;  %p658_p12 = pnand %p657_p11, %p774_p5 }
  0x16   : > { %402 = vmatpush.bf16.xpose.msra.mxu1 %v590_v10  ;;  %v297_v15 = vsel %vm289_vm0, %v576_v14, 0  ;;  %v588_v16 = vld [vmem:[%s889_s3 + $0x28] sm:$0xff]  ;;  %v575_v17 = vld [vmem:[%s887_s1] sm:$0xff]  ;;  %s504_s12 = sshll.u32 %s899_s30, 3  ;;  %v586_v23 = vld [vmem:[%s889_s3 + $0x18] sm:$0xff]  ;;  %p663_p2 = por %p662_p1, %p661_p0 }
  0x17   : > { %v294_v18 = vsel %vm289_vm0, %v575_v17, 0  ;;  %s223_s15 = scalar_lea.vmem %s886_s0, %s504_s12  ;;  %v587_v19 = vld [vmem:[%s889_s3 + $0x20] sm:$0xff]  ;;  %v585_v24 = vld [vmem:[%s889_s3 + $0x10] sm:$0xff]  ;;  %v584_v25 = vld [vmem:[%s889_s3 + $0x8] sm:$0xff]  ;;  %s216_s12 = sand.u32 1, %s694_s19  }
  0x18   : > { %v226_v20 = vld [vmem:[%s223_s15] sm:$0xff]  ;;  %v227_v21 = vld [vmem:[%s223_s15 + $0x8] sm:$0xff]  ;;  %s502_s13 = sshll.u32 %s216_s12, 3  ;;  %s421_s22 = scalar_lea.sflag [#allocation3], %s216_s12 }
  0x19   : > { %v228_v22 = vpack.c.bf16 %v227_v21, %v226_v20  ;;  %v583_v26 = vld [vmem:[%s889_s3] sm:$0xff]  ;;  %s218_s26 = scalar_lea.vmem [#allocation2], %s502_s13  ;;  %p659_p13 = pneg %p658_p12 }
  0x1a   : > { %v638_v28 = vld [vmem:[%s888_s2] ss:$0 sm:$0xff]  ;;  %s856_s30 = sshll.u32 %s218_s26, 4  ;;  %s434_s30 = int_to_ptr.vmem [resolvable:$true] %s856_s30 }
  0x1b   : > { %v639_v36 = vld [vmem:[%s890_s4] ss:$0 sm:$0xff]  ;;  %p664_p3 = pnand %p663_p2, %p659_p13 }
  0x1d   : > { %318 = vmatpush.bf16.xpose.msra.mxu0 %v312_v3 }
  0x1e   : > { %403 = vmatpush.bf16.xpose.msra.mxu1 %v589_v13 }
  0x25   : > { %319 = vmatpush.bf16.xpose.msra.mxu0 %v309_v5 }
  0x26   : > { %404 = vmatpush.bf16.xpose.msra.mxu1 %v588_v16 }
  0x2d   : > { %320 = vmatpush.bf16.xpose.msra.mxu0 %v306_v7 }
  0x2e   : > { %405 = vmatpush.bf16.xpose.msra.mxu1 %v587_v19 }
  0x35   : > { %321 = vmatpush.bf16.xpose.msra.mxu0 %v303_v9 }
  0x36   : > { %406 = vmatpush.bf16.xpose.msra.mxu1 %v586_v23 }
  0x3d   : > { %322 = vmatpush.bf16.xpose.msra.mxu0 %v300_v12 }
  0x3e   : > { %407 = vmatpush.bf16.xpose.msra.mxu1 %v585_v24 }
  0x45   : > { %323 = vmatpush.bf16.xpose.msra.mxu0 %v297_v15 }
  0x46   : > { %408 = vmatpush.bf16.xpose.msra.mxu1 %v584_v25 }
  0x4d   : > { %324 = vmatpush.bf16.xpose.msra.mxu0 %v294_v18 }
  0x4e   : > { %409 = vmatpush.bf16.xpose.msra.mxu1 %v583_v26 }
  0x54   : > { %537 = vmatmul.msk.bf16.vlgmr.msra.gmra.mxu0 %vm289_vm0, %v228_v22 }
  0xd1   : > { %v326_v27 = vpop.f32.mrf.mxu0 }
  0xd2   : > { %v327_v29 = vadd.f32 %v638_v28, %v326_v27 }
  0xd4   : > { %v331_v32 = vmax.f32 %v327_v29, 0.0 }
  0xd9   : > { %v328_v30 = vpop.f32.mrf.mxu0 }
  0xda   : > { %v329_v31 = vadd.f32 %v638_v28, %v328_v30 }
  0xdc   : > { %v332_v33 = vmax.f32 %v329_v31, 0.0 }
  0xde   : > { %v333_v34 = vpack.c.bf16 %v332_v33, %v331_v32 }
  0xe0   : > { %410 = vmatmul.bf16.vlgmr.msra.gmra.mxu1 %v333_v34 }
 0x15d   : > { %v411_v35 = vpop.f32.mrf.mxu1 }
 0x15e   : > { %v412_v38 = vadd.f32 %v639_v36, %v411_v35 }
 0x165   : > { %v413_v37 = vpop.f32.mrf.mxu1 }
 0x166   : > { %v414_v39 = vadd.f32 %v639_v36, %v413_v37 }
 0x168   : > { %v595_v40 = vpack.c.bf16 %v414_v39, %v412_v38 }
 0x16a   : > { %596 = vst [vmem:[%s218_s26] sm:$0xff] %v595_v40  }
 0x16b   : > { %667 = shalt.err (!%p664_p3)
}
 0x16c   : > { %s704_s12 = smov 64   ;;  %s705_s15 = smov 4  }
 0x16d   : > { %597 = dma.vmem_to_hbm [thread:$0]  (%p774_p5), %s434_s30, 128, %s436_s6, %s421_s22, %s704_s12, %s704_s12, %s705_s15  }
 0x16e PF: > { %p603_p4 = scmp.ge.s32.totalorder %s702_s21, 2  ;;  %s450_s16 = sand.u32 1, %s690_s18  }
 0x16f   : > { %s451_s17 = scalar_lea.sflag [#allocation3], %s450_s16 }
 0x170   : > { %p600_p7 = pnand %p603_p4, %p778_p6 }
 0x172   : > { %p601_p8 = pneg %p600_p7 }
 0x174   : > { %685 = dma.done.wait (%p601_p8), %s451_s17, 128  }
 0x175   : > { %687 = vsyncadd (%p601_p8), %s451_s17, 4294967168  ;;  %p15_p9 = scmp.ge.s32.totalorder %s761_s24, 4   ;;  %s894_s18 = smov %s694_s19 }
 0x176   : > { %s895_s19 = smov %s698_s20  ;;  %s896_s20 = smov %s772_s27 }
 0x177   : > { %s897_s21 = smov %s761_s24  ;;  %17 = sbr.rel (!%p15_p9) target bundleno = 3 (0x3), region = 75 }
 0x17c   :  { %457 = vsyncpa [#allocation3], 1 }
 0x17d   :  { %459 = vsyncpa [#allocation3 + $0x1], 1 }

</bundles_post_ra>
